<compile_context>
chip_gen: v5e
topology: v5e:2x2
jax: 0.10.0
libtpu: 0.0.40
codegen_flags: <defaults>
</compile_context>

<pallas_src>
import numpy as np
import jax
import jax.numpy as jnp
from jax import lax
from jax.experimental import pallas as pl
from jax.experimental.pallas import tpu as pltpu


# ----------------------------------------------------------------------------
# Parameter init (deterministic, PyTorch-default-style uniform fan-in bounds)
# ----------------------------------------------------------------------------
def init_conv(key, cout, cin, kh, kw):
    k1, k2 = jax.random.split(key)
    fan_in = cin * kh * kw
    bound = 1.0 / np.sqrt(fan_in)
    w = jax.random.uniform(k1, (cout, cin, kh, kw), jnp.float32, -bound, bound)
    b = jax.random.uniform(k2, (cout,), jnp.float32, -bound, bound)
    return w, b


# ----------------------------------------------------------------------------
# Build-time glue: convs / pools as dense (in_feat, out_feat) matrices.
# Feature index convention: c * H * W + h * W + w  (channel-major == NCHW flatten)
# ----------------------------------------------------------------------------
def conv_to_matrix(w, b, H, W, pad):
    w = np.asarray(w, np.float32)
    b = np.asarray(b, np.float32)
    Cout, Cin, KH, KW = w.shape
    OH = H + 2 * pad - KH + 1
    OW = W + 2 * pad - KW + 1
    M = np.zeros((Cin * H * W, Cout * OH * OW), np.float32)
    bvec = np.zeros((1, Cout * OH * OW), np.float32)
    for oc in range(Cout):
        for oh in range(OH):
            for ow in range(OW):
                oidx = oc * OH * OW + oh * OW + ow
                bvec[0, oidx] = b[oc]
                for ic in range(Cin):
                    for kh in range(KH):
                        for kw in range(KW):
                            ih = oh + kh - pad
                            iw = ow + kw - pad
                            if 0 <= ih < H and 0 <= iw < W:
                                M[ic * H * W + ih * W + iw, oidx] += w[oc, ic, kh, kw]
    return M, bvec, OH, OW


def pool_select_matrices(C, H, W):
    """Four 0/1 selection matrices, one per position inside the 2x2 window."""
    OH, OW = H // 2, W // 2
    mats = []
    for dy in range(2):
        for dx in range(2):
            S = np.zeros((C * H * W, C * OH * OW), np.float32)
            for c in range(C):
                for oh in range(OH):
                    for ow in range(OW):
                        S[c * H * W + (2 * oh + dy) * W + (2 * ow + dx),
                          c * OH * OW + oh * OW + ow] = 1.0
            mats.append(S)
    return mats, OH, OW


def _round_up(n, m):
    return ((n + m - 1) // m) * m


# Packed weight slab row layout (bf16, 128 lanes wide, 16-row-aligned slices).
W1_OFF, W2_OFF, W3_OFF, W4_OFF, W_ROWS = 0, 64, 96, 224, 352


# ----------------------------------------------------------------------------
# Pallas kernel: entire TinyCNN forward on one (TB, 64) batch tile.
# ----------------------------------------------------------------------------
def tinycnn_kernel(x_ref, w_ref, b_ref, o_ref):
    f32, bf16 = jnp.float32, jnp.bfloat16

    x = x_ref[...]                       # (TB, 64) bf16 — real features only

    # Static, tile-aligned row slices of the packed weight slab (free at runtime).
    w1 = w_ref[W1_OFF:W2_OFF, :]         # conv1 with maxpool selection folded   (64, 128)
    w2 = w_ref[W2_OFF:W3_OFF, :]         # conv2                                 (32, 128)
    w3 = w_ref[W3_OFF:W4_OFF, :]         # avgpool*0.25 fused into conv3         (128, 128)
    w4 = w_ref[W4_OFF:W_ROWS, :]         # conv_out                              (128, 128)

    b1 = b_ref[0:1, :]                   # biases stay f32 for the VPU adds
    b2 = b_ref[1:2, :]
    b3 = b_ref[2:3, :]
    b4 = b_ref[3:4, :]

    # conv1 (3x3, pad 1) + relu, maxpool selection pre-applied       -> (TB, 128)
    s = jnp.maximum(jnp.dot(x, w1, preferred_element_type=f32) + b1, 0.0)

    # maxpool 2x2: pure VPU maxes over the four 32-lane window slices -> (TB, 32)
    p1 = jnp.maximum(jnp.maximum(s[:, 0:32], s[:, 32:64]),
                     jnp.maximum(s[:, 64:96], s[:, 96:128]))

    # conv2 (3x3, pad 1) + relu (padded lanes 64:128 stay exactly 0)  -> (TB, 128)
    h2 = jnp.maximum(
        jnp.dot(p1.astype(bf16), w2, preferred_element_type=f32) + b2, 0.0)

    # avgpool 2x2 (folded into weights) + conv3 (1x1) + relu          -> (TB, 128)
    h3 = jnp.maximum(
        jnp.dot(h2.astype(bf16), w3, preferred_element_type=f32) + b3, 0.0)

    # conv_out (2x2 -> 1x1).  Only lanes 0:2 are real; store a narrow 8-lane block.
    y = jnp.dot(h3.astype(bf16), w4, preferred_element_type=f32) + b4
    o_ref[...] = y[:, 0:8]


# ----------------------------------------------------------------------------
# Wrapper
# ----------------------------------------------------------------------------
def make_tiny_cnn(params, *, tb_max=2048):
    (w1, b1), (w2, b2), (w3, b3), (w4, b4) = params

    M1, bv1, H1, W1 = conv_to_matrix(w1, b1, 8, 8, pad=1)        # (64, 128)
    S1, Hp1, Wp1 = pool_select_matrices(2, H1, W1)               # 4 x (128, 32)
    Scat = np.concatenate(S1, axis=1)                            # (128, 128)
    M2, bv2, H2, W2 = conv_to_matrix(w2, b2, Hp1, Wp1, pad=1)    # (32, 64)
    S2, Hp2, Wp2 = pool_select_matrices(4, H2, W2)               # 4 x (64, 16)
    A2 = sum(S2) * 0.25                                          # avgpool as matrix
    M3, bv3, H3, W3 = conv_to_matrix(w3, b3, Hp2, Wp2, pad=0)    # (16, 8)
    M3f = A2 @ M3                                                # avgpool fused into conv3
    M4, bv4, H4, W4 = conv_to_matrix(w4, b4, H3, W3, pad=0)      # (8, 2)
    assert H4 == 1 and W4 == 1

    # Fold the 0/1 maxpool selection into conv1 (exact: bias/ReLU commute through it).
    M1f = M1 @ Scat                                              # (64, 128)
    bv1f = bv1 @ Scat                                            # (1, 128)

    # One contiguous, lane-dense, 16-row-aligned weight slab (cast to bf16 once).
    Wslab = np.zeros((W_ROWS, 128), np.float32)
    Wslab[W1_OFF:W1_OFF + 64, :128] = M1f
    Wslab[W2_OFF:W2_OFF + 32, :64] = M2
    Wslab[W3_OFF:W3_OFF + 64, :8] = M3f
    Wslab[W4_OFF:W4_OFF + 8, :2] = M4
    w_slab = jnp.asarray(Wslab, jnp.bfloat16)

    # One f32 bias slab (rows 0..3 = conv1∘select, conv2, conv3, conv_out).
    Bslab = np.zeros((8, 128), np.float32)
    Bslab[0, :128] = bv1f[0]
    Bslab[1, :64] = bv2[0]
    Bslab[2, :8] = bv3[0]
    Bslab[3, :2] = bv4[0]
    b_slab = jnp.asarray(Bslab)

    def forward(x_nchw):
        B = x_nchw.shape[0]
        # Lane-dense (B, 64) bf16 input: NCHW channel-major flatten, no zero-pad copy.
        x_flat = x_nchw.reshape(B, -1).astype(jnp.bfloat16)

        # Batch tile: as big as useful (amortize per-step pipeline overhead), multiple
        # of 16, capped near B/2 so v7x megacore always has >=2 grid steps to shard.
        TB = max(16, min(tb_max, _round_up(pl.cdiv(B, 2), 16)))
        grid = (pl.cdiv(B, TB),)   # ragged final tile handled by Pallas masking

        out = pl.pallas_call(
            tinycnn_kernel,
            out_shape=jax.ShapeDtypeStruct((B, 8), jnp.float32),
            grid=grid,
            in_specs=[
                pl.BlockSpec((TB, 64), lambda i: (i, 0)),       # batch tile, pipelined
                pl.BlockSpec((W_ROWS, 128), lambda i: (0, 0)),  # weights: VMEM-resident
                pl.BlockSpec((8, 128), lambda i: (0, 0)),       # biases:  VMEM-resident
            ],
            out_specs=pl.BlockSpec((TB, 8), lambda i: (i, 0)),  # narrow writeback
            compiler_params=pltpu.CompilerParams(
                dimension_semantics=("parallel",)),             # megacore split on v7x
        )(x_flat, w_slab, b_slab)
        return out[:, :2]

    return forward


# ----------------------------------------------------------------------------
# Pure-JAX f32 reference (NCHW), used to sanity-check the kernel.
# ----------------------------------------------------------------------------
def ref_forward(x, params):
    (w1, b1), (w2, b2), (w3, b3), (w4, b4) = params

    def conv(h, w, b, pad):
        y = lax.conv_general_dilated(
            h, w, window_strides=(1, 1), padding=[(pad, pad), (pad, pad)],
            dimension_numbers=('NCHW', 'OIHW', 'NCHW'))
        return y + b[None, :, None, None]

    h = jax.nn.relu(conv(x, w1, b1, 1))
    h = lax.reduce_window(h, -jnp.inf, lax.max, (1, 1, 2, 2), (1, 1, 2, 2), 'VALID')
    h = jax.nn.relu(conv(h, w2, b2, 1))
    h = lax.reduce_window(h, 0.0, lax.add, (1, 1, 2, 2), (1, 1, 2, 2), 'VALID') / 4.0
    h = jax.nn.relu(conv(h, w3, b3, 0))
    h = conv(h, w4, b4, 0)
    return h[:, :, 0, 0]


if __name__ == "__main__":
    key = jax.random.PRNGKey(0)
    k_x, k1, k2, k3, k4 = jax.random.split(key, 5)

    params = (
        init_conv(k1, 2, 1, 3, 3),   # conv1
        init_conv(k2, 4, 2, 3, 3),   # conv2
        init_conv(k3, 2, 4, 1, 1),   # conv3
        init_conv(k4, 2, 2, 2, 2),   # conv_out
    )
    forward = make_tiny_cnn(params)

    # bf16 matmul operands (f32 accumulation) -> looser tolerance than pure f32.
    RTOL, ATOL = 5e-2, 1e-2

    # Small-batch check (B=2, NCHW 8x8 input exactly as in the PyTorch module).
    x = jax.random.normal(k_x, (2, 1, 8, 8), jnp.float32)
    out = forward(x)
    jax.block_until_ready(out)
    ref = ref_forward(x, params)
    np.testing.assert_allclose(np.asarray(out), np.asarray(ref), rtol=RTOL, atol=ATOL)
    assert out.shape == (2, 2)

    # Larger, non-divisible batch: exercises the 2-step grid, the ragged final
    # tile (partial-block masking), and the megacore-friendly TB selection.
    x_big = jax.random.normal(jax.random.PRNGKey(1), (528, 1, 8, 8), jnp.float32)
    out_big = forward(x_big)
    jax.block_until_ready(out_big)
    ref_big = ref_forward(x_big, params)
    np.testing.assert_allclose(np.asarray(out_big), np.asarray(ref_big),
                               rtol=RTOL, atol=ATOL)
    assert out_big.shape == (528, 2)

    print("KERNEL_OK")
</pallas_src>

<mosaic_0001>
module attributes {stable_mosaic.version = 11 : i64} {
  func.func @tinycnn_kernel(%arg0: i32, %arg1: memref<16x64xbf16, #tpu.memory_space<vmem>>, %arg2: memref<352x128xbf16, #tpu.memory_space<vmem>>, %arg3: memref<8x128xf32, #tpu.memory_space<vmem>>, %arg4: memref<16x8xf32, #tpu.memory_space<vmem>>) attributes {dimension_semantics = [#tpu.dimension_semantics<parallel>], iteration_bounds = array<i64: 1>, scalar_prefetch = 0 : i64, scratch_operands = 0 : i64, tpu.core_type = #tpu.core_type<tc>, window_params = [{transform_indices = @transform_0, window_bounds = array<i64: 16, 64>}, {pipeline_mode = #tpu.pipeline_mode<synchronous>, transform_indices = @transform_1, window_bounds = array<i64: 352, 128>}, {pipeline_mode = #tpu.pipeline_mode<synchronous>, transform_indices = @transform_2, window_bounds = array<i64: 8, 128>}, {transform_indices = @transform_3, window_bounds = array<i64: 16, 8>}]} {
    %c0 = arith.constant 0 : index
    %c0_0 = arith.constant 0 : index
    %0 = vector.load %arg1[%c0, %c0_0] : memref<16x64xbf16, #tpu.memory_space<vmem>>, vector<16x64xbf16>
    %c0_1 = arith.constant 0 : index
    %c0_2 = arith.constant 0 : index
    %1 = vector.load %arg2[%c0_1, %c0_2] : memref<352x128xbf16, #tpu.memory_space<vmem>>, vector<64x128xbf16>
    %c64 = arith.constant 64 : index
    %c0_3 = arith.constant 0 : index
    %2 = vector.load %arg2[%c64, %c0_3] : memref<352x128xbf16, #tpu.memory_space<vmem>>, vector<32x128xbf16>
    %c96 = arith.constant 96 : index
    %c0_4 = arith.constant 0 : index
    %3 = vector.load %arg2[%c96, %c0_4] : memref<352x128xbf16, #tpu.memory_space<vmem>>, vector<128x128xbf16>
    %c224 = arith.constant 224 : index
    %c0_5 = arith.constant 0 : index
    %4 = vector.load %arg2[%c224, %c0_5] : memref<352x128xbf16, #tpu.memory_space<vmem>>, vector<128x128xbf16>
    %c0_6 = arith.constant 0 : index
    %c0_7 = arith.constant 0 : index
    %5 = vector.load %arg3[%c0_6, %c0_7] : memref<8x128xf32, #tpu.memory_space<vmem>>, vector<1x128xf32>
    %c1 = arith.constant 1 : index
    %c0_8 = arith.constant 0 : index
    %6 = vector.load %arg3[%c1, %c0_8] : memref<8x128xf32, #tpu.memory_space<vmem>>, vector<1x128xf32>
    %c2 = arith.constant 2 : index
    %c0_9 = arith.constant 0 : index
    %7 = vector.load %arg3[%c2, %c0_9] : memref<8x128xf32, #tpu.memory_space<vmem>>, vector<1x128xf32>
    %c3 = arith.constant 3 : index
    %c0_10 = arith.constant 0 : index
    %8 = vector.load %arg3[%c3, %c0_10] : memref<8x128xf32, #tpu.memory_space<vmem>>, vector<1x128xf32>
    %cst = arith.constant dense<0.000000e+00> : vector<16x128xf32>
    %9 = tpu.matmul %0, %1, %cst {dimension_numbers = #tpu.dot_dimension_numbers<[1], [0], [0], [1], [0, 0, 1, 1], [], []>} : vector<16x64xbf16>, vector<64x128xbf16>, vector<16x128xf32> -> vector<16x128xf32>
    %10 = vector.broadcast %5 : vector<1x128xf32> to vector<16x128xf32>
    %11 = arith.addf %9, %10 : vector<16x128xf32>
    %cst_11 = arith.constant 0.000000e+00 : f32
    %12 = vector.broadcast %cst_11 : f32 to vector<16x128xf32>
    %13 = arith.maximumf %11, %12 : vector<16x128xf32>
    %14 = vector.extract_strided_slice %13 {offsets = [0, 0], sizes = [16, 32], strides = [1, 1]} : vector<16x128xf32> to vector<16x32xf32>
    %15 = vector.extract_strided_slice %13 {offsets = [0, 32], sizes = [16, 32], strides = [1, 1]} : vector<16x128xf32> to vector<16x32xf32>
    %16 = arith.maximumf %14, %15 : vector<16x32xf32>
    %17 = vector.extract_strided_slice %13 {offsets = [0, 64], sizes = [16, 32], strides = [1, 1]} : vector<16x128xf32> to vector<16x32xf32>
    %18 = vector.extract_strided_slice %13 {offsets = [0, 96], sizes = [16, 32], strides = [1, 1]} : vector<16x128xf32> to vector<16x32xf32>
    %19 = arith.maximumf %17, %18 : vector<16x32xf32>
    %20 = arith.maximumf %16, %19 : vector<16x32xf32>
    %21 = arith.truncf %20 : vector<16x32xf32> to vector<16x32xbf16>
    %cst_12 = arith.constant dense<0.000000e+00> : vector<16x128xf32>
    %22 = tpu.matmul %21, %2, %cst_12 {dimension_numbers = #tpu.dot_dimension_numbers<[1], [0], [0], [1], [0, 0, 1, 1], [], []>} : vector<16x32xbf16>, vector<32x128xbf16>, vector<16x128xf32> -> vector<16x128xf32>
    %23 = vector.broadcast %6 : vector<1x128xf32> to vector<16x128xf32>
    %24 = arith.addf %22, %23 : vector<16x128xf32>
    %cst_13 = arith.constant 0.000000e+00 : f32
    %25 = vector.broadcast %cst_13 : f32 to vector<16x128xf32>
    %26 = arith.maximumf %24, %25 : vector<16x128xf32>
    %27 = arith.truncf %26 : vector<16x128xf32> to vector<16x128xbf16>
    %cst_14 = arith.constant dense<0.000000e+00> : vector<16x128xf32>
    %28 = tpu.matmul %27, %3, %cst_14 {dimension_numbers = #tpu.dot_dimension_numbers<[1], [0], [0], [1], [0, 0, 1, 1], [], []>} : vector<16x128xbf16>, vector<128x128xbf16>, vector<16x128xf32> -> vector<16x128xf32>
    %29 = vector.broadcast %7 : vector<1x128xf32> to vector<16x128xf32>
    %30 = arith.addf %28, %29 : vector<16x128xf32>
    %cst_15 = arith.constant 0.000000e+00 : f32
    %31 = vector.broadcast %cst_15 : f32 to vector<16x128xf32>
    %32 = arith.maximumf %30, %31 : vector<16x128xf32>
    %33 = arith.truncf %32 : vector<16x128xf32> to vector<16x128xbf16>
    %cst_16 = arith.constant dense<0.000000e+00> : vector<16x128xf32>
    %34 = tpu.matmul %33, %4, %cst_16 {dimension_numbers = #tpu.dot_dimension_numbers<[1], [0], [0], [1], [0, 0, 1, 1], [], []>} : vector<16x128xbf16>, vector<128x128xbf16>, vector<16x128xf32> -> vector<16x128xf32>
    %35 = vector.broadcast %8 : vector<1x128xf32> to vector<16x128xf32>
    %36 = arith.addf %34, %35 : vector<16x128xf32>
    %37 = vector.extract_strided_slice %36 {offsets = [0, 0], sizes = [16, 8], strides = [1, 1]} : vector<16x128xf32> to vector<16x8xf32>
    %c0_17 = arith.constant 0 : index
    %c0_18 = arith.constant 0 : index
    %38 = vector.load %arg4[%c0_17, %c0_18] : memref<16x8xf32, #tpu.memory_space<vmem>>, vector<16x8xf32>
    tpu.vector_store %arg4[%c0_17, %c0_18], %37 {strides = array<i32>} : memref<16x8xf32, #tpu.memory_space<vmem>>, vector<16x8xf32>,
    return
  }
  func.func @transform_0(%arg0: i32) -> (i32, i32) {
    %c0_i32 = arith.constant 0 : i32
    %c0_i32_0 = arith.constant 0 : i32
    return %arg0, %c0_i32 : i32, i32
  }
  func.func @transform_1(%arg0: i32) -> (i32, i32) {
    %c0_i32 = arith.constant 0 : i32
    %c0_i32_0 = arith.constant 0 : i32
    %c0_i32_1 = arith.constant 0 : i32
    return %c0_i32, %c0_i32_0 : i32, i32
  }
  func.func @transform_2(%arg0: i32) -> (i32, i32) {
    %c0_i32 = arith.constant 0 : i32
    %c0_i32_0 = arith.constant 0 : i32
    %c0_i32_1 = arith.constant 0 : i32
    return %c0_i32, %c0_i32_0 : i32, i32
  }
  func.func @transform_3(%arg0: i32) -> (i32, i32) {
    %c0_i32 = arith.constant 0 : i32
    %c0_i32_0 = arith.constant 0 : i32
    return %arg0, %c0_i32 : i32, i32
  }
}

</mosaic_0001>

<bundles_post_ra>
// kernel: tpu_custom_call.1
= control target key start
LH: loop header
LB: loop body
LE: loop exit
PB: predicated region body
PF: predicated region fallthrough
CT: control target
= control target key end

     0   :  { %8 = vsyncpa [#allocation3], 0  ;;  %s677_s0 = inlined_call_operand.hbm [shape: bf16[2,64], index: 0, kind: input, shape index: {}]   ;;  %s678_s1 = inlined_call_operand.hbm [shape: bf16[352,128], index: 1, kind: input, shape index: {}]   ;;  %s679_s2 = inlined_call_operand.hbm [shape: f32[8,128], index: 2, kind: input, shape index: {}]   ;;  %s680_s3 = inlined_call_operand.hbm [shape: f32[2,8], index: 3, kind: output, shape index: {}]  }
   0x1   :  { %9 = vsyncpa [#allocation6], 0 }
   0x2   :  { %10 = vsyncpa [#allocation4], 0  ;;  %s28_s14 = sshll.u32 %s678_s1, 4  ;;  %s29_s14 = int_to_ptr.hbm [resolvable:$true] %s28_s14 }
   0x3   :  { %14 = vsyncadd [#allocation3], 112  ;;  %s631_s15 = smov [#allocation5]   ;;  %s15_s19 = sshll.u32 %s677_s0, 4  ;;  %s16_s19 = int_to_ptr.hbm [resolvable:$true] %s15_s19 }
   0x4   :  { %s30_s16 = sshll.u32 %s631_s15, 4  ;;  %s632_s20 = smov 64   ;;  %s31_s16 = int_to_ptr.vmem [resolvable:$true] %s30_s16 }
   0x5   :  { %s633_s21 = smov 4   ;;  %s634_s22 = smov [#allocation2]  }
   0x6   :  { %36 = dma.hbm_to_vmem [thread:$0]  %s29_s14, 2816, %s31_s16, [#allocation6], %s632_s20, %s632_s20, %s633_s21  }
   0x7   :  { %s17_s23 = sshll.u32 %s634_s22, 4  ;;  %s635_s24 = smov 16   ;;  %s18_s23 = int_to_ptr.vmem [resolvable:$true] %s17_s23 }
   0x8   :  { %s636_s1 = smov 1   ;;  %s42_s27 = sshll.u32 %s679_s2, 4  ;;  %s43_s27 = int_to_ptr.hbm [resolvable:$true] %s42_s27 }
   0x9   :  { %23 = dma.hbm_to_vmem [thread:$0]  %s16_s19, 16, %s18_s23, [#allocation3], %s635_s24, %s635_s24, %s636_s1  }
   0xa   :  { %s637_s28 = smov [#allocation7]  }
   0xb   :  { %s44_s29 = sshll.u32 %s637_s28, 4  ;;  %s45_s29 = int_to_ptr.vmem [resolvable:$true] %s44_s29 }
   0xc   :  { %47 = dma.hbm_to_vmem [thread:$0]  %s43_s27, 128, %s45_s29, [#allocation6]  }
   0xd   :  { %625 = dma.done.wait [#allocation3], 128  }
   0xe   :  { %626 = vsyncadd [#allocation3], 4294967168 }
   0xf   :  { %627 = dma.done.wait [#allocation6], 2944  }
  0x10   :  { %628 = vsyncadd [#allocation6], 4294964352  ;;  %v485_v0 = vld [vmem:[#allocation5 + $0x18] sm:$0xff]  ;;  %v484_v2 = vld [vmem:[#allocation5 + $0x10] sm:$0xff]  ;;  %vm166_vm0 = vcmask 523264   ;;  %s638_s0 = smov 96  }
  0x11   :  { %v61_v1 = vld [vmem:[#allocation2] sm:$0x1]  ;;  %173 = vmatpush.bf16.msra.mxu0 %v485_v0  ;;  %v62_v3 = vld [vmem:[#allocation2 + $0x1] sm:$0x1]  ;;  %v63_v4 = vld [vmem:[#allocation2 + $0x2] sm:$0x1] }
  0x12   :  { %v64_v5 = vld [vmem:[#allocation2 + $0x3] sm:$0x1]  ;;  %v483_v6 = vld [vmem:[#allocation5 + $0x8] sm:$0xff]  ;;  %v65_v7 = vld [vmem:[#allocation2 + $0x4] sm:$0x1]  ;;  %vm219_vm1 = vcmask 261120  }
  0x13   :  { %119 = vst [vmem:[#allocation1] ss:$9 sm:$0xff] %v61_v1  ;;  %v66_v8 = vld [vmem:[#allocation2 + $0x5] sm:$0x1]  ;;  %v67_v9 = vld [vmem:[#allocation2 + $0x6] sm:$0x1] }
  0x14   :  { %122 = vst [vmem:[#allocation1 + $0x1] ss:$9 sm:$0xff] %v62_v3  ;;  %v68_v10 = vld [vmem:[#allocation2 + $0x7] sm:$0x1]  ;;  %v482_v11 = vld [vmem:[#allocation5] sm:$0xff]  ;;  %v487_v21 = vld [vmem:[#allocation5 + $0x28] sm:$0xff] }
  0x15   :  { %174 = vmatpush.bf16.msra.mxu0 %v484_v2  ;;  %125 = vst [vmem:[#allocation1 + $0x2] ss:$9 sm:$0xff] %v63_v4  ;;  %v525_v14 = vld [vmem:[#allocation7] ss:$0 sm:$0xff]  ;;  %229 = vmatpush.bf16.msra.mxu1 %v487_v21  ;;  %v486_v28 = vld [vmem:[#allocation5 + $0x20] sm:$0xff]  ;;  %v495_v29 = vld [vmem:[#allocation5 + $0x68] sm:$0xff] }
  0x16   :  { %128 = vst [vmem:[#allocation1 + $0x3] ss:$9 sm:$0xff] %v64_v5  ;;  %289 = vmatpush.bf16.msra.mxu2 %v495_v29  ;;  %v494_v30 = vld [vmem:[#allocation5 + $0x60] sm:$0xff]  ;;  %v493_v31 = vld [vmem:[#allocation5 + $0x58] sm:$0xff]  ;;  %v492_v32 = vld [vmem:[#allocation5 + $0x50] sm:$0xff]  ;;  %vm369_vm2 = vcmask 64512  }
  0x17   :  { %131 = vst [vmem:[#allocation1 + $0x4] ss:$9 sm:$0xff] %v65_v7  ;;  %v491_v39 = vld [vmem:[#allocation5 + $0x48] sm:$0xff]  ;;  %v490_v40 = vld [vmem:[#allocation5 + $0x40] sm:$0xff]  ;;  %v489_v41 = vld [vmem:[#allocation5 + $0x38] sm:$0xff] }
  0x18   :  { %134 = vst [vmem:[#allocation1 + $0x5] ss:$9 sm:$0xff] %v66_v8  ;;  %v488_v42 = vld [vmem:[#allocation5 + $0x30] sm:$0xff]  ;;  %v503_v43 = vld [vmem:[#allocation5 + $0xa8] sm:$0xff]  ;;  %v502_v44 = vld [vmem:[#allocation5 + $0xa0] sm:$0xff] }
  0x19   :  { %175 = vmatpush.bf16.msra.mxu0 %v483_v6  ;;  %137 = vst [vmem:[#allocation1 + $0x6] ss:$9 sm:$0xff] %v67_v9  ;;  %230 = vmatpush.bf16.msra.mxu1 %v486_v28  ;;  %v501_v45 = vld [vmem:[#allocation5 + $0x98] sm:$0xff]  ;;  %v500_v46 = vld [vmem:[#allocation5 + $0x90] sm:$0xff]  ;;  %v499_v55 = vld [vmem:[#allocation5 + $0x88] sm:$0xff] }
  0x1a   :  { %140 = vst [vmem:[#allocation1 + $0x7] ss:$9 sm:$0xff] %v68_v10  ;;  %290 = vmatpush.bf16.msra.mxu2 %v494_v30  ;;  %355 = vmatpush.bf16.msra.mxu3 %v503_v43  ;;  %v526_v48 = vld [vmem:[#allocation7 + $0x1] ss:$0 sm:$0xff]  ;;  %v498_v56 = vld [vmem:[#allocation5 + $0x80] sm:$0xff]  ;;  %v497_v57 = vld [vmem:[#allocation5 + $0x78] sm:$0xff] }
  0x1b   :  { %v496_v58 = vld [vmem:[#allocation5 + $0x70] sm:$0xff] }
  0x1c   :  { %v527_v60 = vld [vmem:[#allocation7 + $0x2] ss:$0 sm:$0xff]  ;;  %v528_v3 = vld [vmem:[#allocation7 + $0x3] ss:$0 sm:$0xff] }
  0x1d   :  { %176 = vmatpush.bf16.msra.mxu0 %v482_v11 }
  0x1e   :  { %291 = vmatpush.bf16.msra.mxu2 %v493_v31  ;;  %356 = vmatpush.bf16.msra.mxu3 %v502_v44 }
  0x21   :  { %v141_v12 = vld [vmem:[#allocation1] sm:$0xff] }
  0x22   :  { %408 = vmatmul.msk.bf16.vlgmr.msra.gmra.mxu0 %vm166_vm0, %v141_v12  ;;  %292 = vmatpush.bf16.msra.mxu2 %v492_v32 }
  0x23   :  { %357 = vmatpush.bf16.msra.mxu3 %v501_v45 }
  0x26   :  { %293 = vmatpush.bf16.msra.mxu2 %v491_v39 }
  0x27   :  { %358 = vmatpush.bf16.msra.mxu3 %v500_v46 }
  0x2a   :  { %294 = vmatpush.bf16.msra.mxu2 %v490_v40 }
  0x2b   :  { %359 = vmatpush.bf16.msra.mxu3 %v499_v55 }
  0x2e   :  { %295 = vmatpush.bf16.msra.mxu2 %v489_v41 }
  0x2f   :  { %360 = vmatpush.bf16.msra.mxu3 %v498_v56 }
  0x32   :  { %296 = vmatpush.bf16.msra.mxu2 %v488_v42 }
  0x33   :  { %361 = vmatpush.bf16.msra.mxu3 %v497_v57 }
  0x37   :  { %362 = vmatpush.bf16.msra.mxu3 %v496_v58 }
  0x9f   :  { %v178_v13 = vpop.f32.mrf.mxu0 }
  0xa0   :  { %v179_v15 = vadd.f32 %v525_v14, %v178_v13 }
  0xa2   :  { %v183_v18 = vmax.f32 %v179_v15, 0.0 }
  0xa7   :  { %v180_v16 = vpop.f32.mrf.mxu0 }
  0xa8   :  { %v181_v17 = vadd.f32 %v525_v14, %v180_v16 }
  0xaa   :  { %v184_v19 = vmax.f32 %v181_v17, 0.0 }
  0xac   :  { %v515_v20 = vpack.i.bf16 %v184_v19, %v183_v18 }
  0xae   :  { %516 = vrot.lane.b32.xlu0 %v515_v20, %s638_s0 }
 0x120   :  { %v517_v22 = vpop.permute.xlu0 %516 }
 0x121   :  { %v519_v23 = vunpack.i.h.bf16 %v517_v22  ;;  %v518_v24 = vunpack.i.l.bf16 %v517_v22 }
 0x123   :  { %v193_v25 = vmax.f32 %v183_v18, %v518_v24  ;;  %v194_v26 = vmax.f32 %v184_v19, %v519_v23 }
 0x125   :  { %v520_v27 = vpack.i.bf16 %v194_v26, %v193_v25 }
 0x127   :  { %521 = vrot.lane.b32.xlu0 %v520_v27, %s632_s20 }
 0x199   :  { %v522_v33 = vpop.permute.xlu0 %521 }
 0x19a   :  { %v524_v34 = vunpack.i.h.bf16 %v522_v33  ;;  %v523_v35 = vunpack.i.l.bf16 %v522_v33 }
 0x19c   :  { %v204_v36 = vmax.f32 %v194_v26, %v524_v34  ;;  %v203_v37 = vmax.f32 %v193_v25, %v523_v35 }
 0x19e   :  { %v205_v38 = vpack.c.bf16 %v204_v36, %v203_v37 }
 0x1a0   :  { %417 = vmatmul.msk.bf16.vlgmr.msra.gmra.mxu1 %vm219_vm1, %v205_v38 }
 0x21d   :  { %v232_v47 = vpop.f32.mrf.mxu1 }
 0x21e   :  { %v233_v49 = vadd.f32 %v526_v48, %v232_v47 }
 0x220   :  { %v237_v52 = vmax.f32 %v233_v49, 0.0 }
 0x225   :  { %v234_v50 = vpop.f32.mrf.mxu1 }
 0x226   :  { %v235_v51 = vadd.f32 %v526_v48, %v234_v50 }
 0x228   :  { %v238_v53 = vmax.f32 %v235_v51, 0.0 }
 0x22a   :  { %v239_v54 = vpack.c.bf16 %v238_v53, %v237_v52 }
 0x22c   :  { %297 = vmatmul.bf16.vlgmr.msra.gmra.mxu2 %v239_v54 }
 0x2af   :  { %v298_v59 = vpop.f32.mrf.mxu2 }
 0x2b0   :  { %v299_v61 = vadd.f32 %v527_v60, %v298_v59 }
 0x2b2   :  { %v303_v0 = vmax.f32 %v299_v61, 0.0 }
 0x2b7   :  { %v300_v62 = vpop.f32.mrf.mxu2 }
 0x2b8   :  { %v301_v63 = vadd.f32 %v527_v60, %v300_v62 }
 0x2ba   :  { %v304_v1 = vmax.f32 %v301_v63, 0.0 }
 0x2bc   :  { %v305_v2 = vpack.c.bf16 %v304_v1, %v303_v0 }
 0x2be   :  { %363 = vmatmul.bf16.vlgmr.msra.gmra.mxu3 %v305_v2 }
 0x341   :  { %v364_v4 = vpop.f32.mrf.mxu3 }
 0x342   :  { %v365_v5 = vadd.f32 %v528_v3, %v364_v4 }
 0x344   :  { %370 = vst.msk [vmem:[#allocation8] sm:$0xff] %vm369_vm2, %v365_v5 }
 0x349   :  { %v366_v6 = vpop.f32.mrf.mxu3 }
 0x34a   :  { %v367_v7 = vadd.f32 %v528_v3, %v366_v6 }
 0x34c   :  { %371 = vst.msk [vmem:[#allocation8 + $0x8] sm:$0xff] %vm369_vm2, %v367_v7 }
 0x34d   :  { %375 = vsyncadd [#allocation4], 224  ;;  %s378_s4 = sshll.u32 %s680_s3, 4  ;;  %s639_s5 = smov [#allocation8]   ;;  %s379_s4 = int_to_ptr.hbm [resolvable:$true] %s378_s4 }
 0x34e   :  { %s376_s6 = sshll.u32 %s639_s5, 4  ;;  %s640_s7 = smov 32   ;;  %s377_s6 = int_to_ptr.vmem [resolvable:$true] %s376_s6 }
 0x34f   :  { %s641_s8 = smov 2  }
 0x350   :  { %384 = dma.vmem_to_hbm [thread:$0]  %s377_s6, 32, %s379_s4, [#allocation4], %s640_s7, %s640_s7, %s641_s8  }
 0x351   :  { %629 = dma.done.wait [#allocation4], 256  }
 0x352   :  { %630 = vsyncadd [#allocation4], 4294967040 }
 0x353   :  { %389 = vsyncpa [#allocation3], 1 }
 0x354   :  { %390 = vsyncpa [#allocation6], 1 }
 0x355   :  { %391 = vsyncpa [#allocation4], 1 }

</bundles_post_ra>
